<compile_context>
chip_gen: v5e
topology: v5e:2x2
jax: 0.10.0
libtpu: 0.0.40
codegen_flags: <defaults>
</compile_context>

<pallas_src>
import math

import jax
import jax.numpy as jnp
from jax.experimental import pallas as pl
from jax.experimental.pallas import tpu as pltpu

BN_EPS = 1e-5


def gap_score_kernel(sc_ref, emb_p_ref, w1_ref, b1_ref, w2_ref, b2_ref, out_ref):
    """One batch tile.

    sc_ref    : (TB, 2, H)  spans_contexts (input dtype, e.g. f32)
    emb_p_ref : (TB, H)     emb_P (input dtype)
    w1_ref    : (3, H, 64)  BN1-folded Linear(3H,64) weight, per concat segment
                            (0: span, 1: emb_P, 2: emb_P*span)   [compute dtype]
    b1_ref    : (1, 64)     BN1-folded bias                      [f32]
    w2_ref    : (1, 64)     BN2-folded Linear(64,1) weight row   [f32]
    b2_ref    : (1, 1)      BN2-folded bias                      [f32]
    out_ref   : (TB, 2)     [act_AP, act_BP]                     [f32]
    """
    cd = w1_ref.dtype                       # MXU compute dtype

    # Split the two spans inside the kernel (single contiguous DMA per tile;
    # no wrapper-side slice/cast HBM pass).
    span_a = sc_ref[:, 0, :]                # (TB, H)
    span_b = sc_ref[:, 1, :]                # (TB, H)
    p = emb_p_ref[...]                      # (TB, H)

    # emb_P * span in the input dtype (f32 in -> no up-cast needed), then one
    # cast to the MXU compute dtype.
    ps_a = (p * span_a).astype(cd)
    ps_b = (p * span_b).astype(cd)

    # Shared emb_P segment: identical for both branches -> one matmul per tile.
    shared = jnp.dot(p.astype(cd), w1_ref[1],
                     preferred_element_type=jnp.float32)          # (TB, 64)
    base = shared + b1_ref[...]                                   # (TB, 64)

    def branch(span, ps):
        acc = (jnp.dot(span.astype(cd), w1_ref[0],
                       preferred_element_type=jnp.float32)
               + jnp.dot(ps, w1_ref[2], preferred_element_type=jnp.float32)
               + base)
        h = jnp.maximum(acc, 0.0)                                 # ReLU
        # Final Linear(64,1): VPU multiply + lane reduction (no N=1 matmul).
        return jnp.sum(h * w2_ref[...], axis=-1, keepdims=True) + b2_ref[...]

    z_a = branch(span_a, ps_a)                                    # (TB, 1)
    z_b = branch(span_b, ps_b)                                    # (TB, 1)

    # Single coalesced store of both output columns.
    out_ref[...] = jnp.concatenate([z_a, z_b], axis=-1).astype(out_ref.dtype)


def init_params(key, hidden):
    """Deterministic parameter init mirroring GAPScoreModel.__init__."""
    k1, k2 = jax.random.split(key)
    in1 = 3 * hidden
    # nn.init.kaiming_normal_ (fan_in, gain=sqrt(2)); PyTorch Linear weight is [out, in].
    w1 = jax.random.normal(k1, (64, in1), jnp.float32) * math.sqrt(2.0 / in1)
    b_lin1 = jnp.zeros((64,), jnp.float32)
    w2 = jax.random.normal(k2, (1, 64), jnp.float32) * math.sqrt(2.0 / 64)
    b_lin2 = jnp.zeros((1,), jnp.float32)
    return {
        "bn1": {"gamma": jnp.ones((in1,), jnp.float32),
                "beta": jnp.zeros((in1,), jnp.float32),
                "mean": jnp.zeros((in1,), jnp.float32),
                "var": jnp.ones((in1,), jnp.float32)},
        "w1": w1, "b_lin1": b_lin1,
        "bn2": {"gamma": jnp.ones((64,), jnp.float32),
                "beta": jnp.zeros((64,), jnp.float32),
                "mean": jnp.zeros((64,), jnp.float32),
                "var": jnp.ones((64,), jnp.float32)},
        "w2": w2, "b_lin2": b_lin2,
    }


def _fold_bn(bn):
    scale = bn["gamma"] / jnp.sqrt(bn["var"] + BN_EPS)
    shift = bn["beta"] - bn["mean"] * scale
    return scale, shift


def _fold_params(params, hidden, compute_dtype):
    """Fold both BatchNorms into the Linear layers (eval mode)."""
    scale1, shift1 = _fold_bn(params["bn1"])        # (3H,)
    scale2, shift2 = _fold_bn(params["bn2"])        # (64,)

    w1 = params["w1"]                               # (64, 3H)
    # (x*s1 + t1) @ W1^T + b1  ==  x @ (W1*s1)^T + (b1 + W1 @ t1)
    w1_folded = (w1 * scale1[None, :]).T            # (3H, 64)
    w1_seg = w1_folded.reshape(3, hidden, 64)       # segments: span / emb_P / emb_P*span
    b1_folded = (params["b_lin1"] + w1 @ shift1).reshape(1, 64)

    w2 = params["w2"]                               # (1, 64)
    w2_row = w2 * scale2[None, :]                   # (1, 64) row vector
    b2_folded = (params["b_lin2"] + w2 @ shift2).reshape(1, 1)

    return (w1_seg.astype(compute_dtype),           # MXU operand
            b1_folded.astype(jnp.float32),
            w2_row.astype(jnp.float32),
            b2_folded.astype(jnp.float32))


def _pick_tile(B, H, in_bytes, cd_bytes, vmem_cap, block_b=None):
    """Batch-tile size from a per-generation VMEM budget (or explicit override)."""
    if block_b is not None:
        tb = min(block_b, B)
        if tb < B:
            tb = max(8, (tb // 8) * 8)
        return tb
    budget = min(vmem_cap // 2, 48 << 20)
    # Per-batch-row VMEM bytes:
    #   spans block (TB,2,H): sublane dim 2 pads to 8 -> 8*H*in_bytes, x2 buffers
    #   emb_P block (TB,H):   H*in_bytes, x2 buffers
    #   in-kernel temporaries (~5 H-wide products/casts + 64-wide f32 acc/relu)
    per_row = (H * (8 * in_bytes * 2
                    + in_bytes * 2
                    + 5 * cd_bytes)
               + 64 * 4 * 6 + 128)
    tb = max(8, budget // per_row)
    if tb >= B:
        return B
    # Keep >=2 grid steps so v7x's second TensorCore gets work, while keeping
    # the per-matmul M tall (>=256 rows) so MXU cadence is LHS-row dominated.
    if B >= 512:
        tb = min(tb, max(256, (pl.cdiv(B, 2) // 128) * 128))
    tb = min(tb, 2048)
    return max(8, (tb // 8) * 8)


def gap_score_forward(spans_contexts, emb_p, params, *,
                      block_b=None, compute_dtype=jnp.float32):
    """Pallas forward.  compute_dtype=jnp.bfloat16 uses bf16 MXU ops (f32 accum)."""
    B, two, H = spans_contexts.shape
    assert two == 2
    assert emb_p.shape == (B, H)

    w1_seg, b1_f, w2_row, b2_f = _fold_params(params, H, compute_dtype)

    in_bytes = jnp.dtype(spans_contexts.dtype).itemsize
    cd_bytes = jnp.dtype(compute_dtype).itemsize
    try:
        vmem_cap = pltpu.get_tpu_info().vmem_capacity_bytes
    except Exception:
        vmem_cap = 64 << 20                      # v7x (smallest per-TC VMEM) fallback

    tb = _pick_tile(B, H, in_bytes, cd_bytes, vmem_cap, block_b)
    grid = (pl.cdiv(B, tb),)
    vmem_limit = int(min(vmem_cap,
                         max(int(1.5 * min(vmem_cap // 2, 48 << 20)), 32 << 20)))

    in_specs = [
        pl.BlockSpec((tb, 2, H), lambda i: (i, 0, 0)),    # spans_contexts (contiguous DMA)
        pl.BlockSpec((tb, H), lambda i: (i, 0)),          # emb_P
        pl.BlockSpec((3, H, 64), lambda i: (0, 0, 0)),    # w1 segments (resident)
        pl.BlockSpec((1, 64), lambda i: (0, 0)),          # b1
        pl.BlockSpec((1, 64), lambda i: (0, 0)),          # w2 row
        pl.BlockSpec((1, 1), lambda i: (0, 0)),           # b2
    ]
    out_specs = pl.BlockSpec((tb, 2), lambda i: (i, 0))

    out2 = pl.pallas_call(
        gap_score_kernel,
        out_shape=jax.ShapeDtypeStruct((B, 2), jnp.float32),
        grid=grid,
        in_specs=in_specs,
        out_specs=out_specs,
        compiler_params=pltpu.CompilerParams(
            dimension_semantics=("parallel",),            # shards over v7x's 2 TCs
            vmem_limit_bytes=vmem_limit),
    )(spans_contexts, emb_p, w1_seg, b1_f, w2_row, b2_f)

    # Constant-zero third column appended outside the kernel (free for XLA).
    return jnp.concatenate([out2, jnp.zeros((B, 1), out2.dtype)], axis=1)


def gap_score_reference(spans_contexts, emb_p, params):
    """Pure-JAX reference of the eval-mode PyTorch forward."""
    def fc(x):
        x = (x - params["bn1"]["mean"]) / jnp.sqrt(params["bn1"]["var"] + BN_EPS)
        x = x * params["bn1"]["gamma"] + params["bn1"]["beta"]
        x = x @ params["w1"].T + params["b_lin1"]
        x = jnp.maximum(x, 0.0)
        x = (x - params["bn2"]["mean"]) / jnp.sqrt(params["bn2"]["var"] + BN_EPS)
        x = x * params["bn2"]["gamma"] + params["bn2"]["beta"]
        return x @ params["w2"].T + params["b_lin2"]

    sa = spans_contexts[:, 0, :]
    sb = spans_contexts[:, 1, :]
    act_ap = fc(jnp.concatenate([sa, emb_p, emb_p * sa], axis=1))
    act_bp = fc(jnp.concatenate([sb, emb_p, emb_p * sb], axis=1))
    return jnp.concatenate([act_ap, act_bp, jnp.zeros_like(act_ap)], axis=1)


def _perturb_bn(params, H, key):
    """Perturb BN parameters / running stats so BN folding is non-trivial."""
    kb1, kb2, kb3, kb4 = jax.random.split(key, 4)
    params["bn1"]["gamma"] = 1.0 + 0.1 * jax.random.normal(kb1, (3 * H,), jnp.float32)
    params["bn1"]["beta"] = 0.1 * jax.random.normal(kb2, (3 * H,), jnp.float32)
    params["bn1"]["mean"] = 0.1 * jax.random.normal(kb3, (3 * H,), jnp.float32)
    params["bn1"]["var"] = 1.0 + 0.1 * jnp.abs(jax.random.normal(kb4, (3 * H,), jnp.float32))
    params["bn2"]["gamma"] = 1.0 + 0.05 * jax.random.normal(kb1, (64,), jnp.float32)
    params["bn2"]["beta"] = 0.05 * jax.random.normal(kb2, (64,), jnp.float32)
    params["bn2"]["mean"] = 0.05 * jax.random.normal(kb3, (64,), jnp.float32)
    params["bn2"]["var"] = 1.0 + 0.05 * jnp.abs(jax.random.normal(kb4, (64,), jnp.float32))
    return params


if __name__ == "__main__":
    B, H = 8, 32
    key = jax.random.PRNGKey(0)
    k_sc, k_p, k_params, k_bn = jax.random.split(key, 4)

    spans_contexts = jax.random.normal(k_sc, (B, 2, H), jnp.float32)
    emb_p = jax.random.normal(k_p, (B, H), jnp.float32)
    params = _perturb_bn(init_params(k_params, H), H, k_bn)

    ref = gap_score_reference(spans_contexts, emb_p, params)

    # f32 path: tight check against the eval-mode reference.
    out_f32 = jax.block_until_ready(
        gap_score_forward(spans_contexts, emb_p, params, compute_dtype=jnp.float32))
    assert out_f32.shape == (B, 3)
    assert jnp.allclose(out_f32, ref, rtol=1e-4, atol=1e-4), (out_f32, ref)

    # bf16 matmul path (v6e/v7x fast path): looser tolerance.
    out_bf16 = jax.block_until_ready(
        gap_score_forward(spans_contexts, emb_p, params, compute_dtype=jnp.bfloat16))
    assert out_bf16.shape == (B, 3)
    assert jnp.allclose(out_bf16, ref, rtol=5e-2, atol=5e-2), (out_bf16, ref)

    # Multi-tile path with a partial last tile (B % tb != 0) to exercise the
    # grid / masked writeback behaviour.
    B2 = 24
    k_sc2, k_p2 = jax.random.split(jax.random.PRNGKey(1))
    sc2 = jax.random.normal(k_sc2, (B2, 2, H), jnp.float32)
    ep2 = jax.random.normal(k_p2, (B2, H), jnp.float32)
    ref2 = gap_score_reference(sc2, ep2, params)
    out2 = jax.block_until_ready(
        gap_score_forward(sc2, ep2, params, block_b=16, compute_dtype=jnp.float32))
    assert out2.shape == (B2, 3)
    assert jnp.allclose(out2, ref2, rtol=1e-4, atol=1e-4), (out2, ref2)

    print("KERNEL_OK")
</pallas_src>

<mosaic_0001>
module attributes {stable_mosaic.version = 11 : i64} {
  func.func @gap_score_kernel(%arg0: i32, %arg1: memref<8x2x32xf32, #tpu.memory_space<vmem>>, %arg2: memref<8x32xf32, #tpu.memory_space<vmem>>, %arg3: memref<3x32x64xf32, #tpu.memory_space<vmem>>, %arg4: memref<1x64xf32, #tpu.memory_space<vmem>>, %arg5: memref<1x64xf32, #tpu.memory_space<vmem>>, %arg6: memref<1x1xf32, #tpu.memory_space<vmem>>, %arg7: memref<8x2xf32, #tpu.memory_space<vmem>>) attributes {dimension_semantics = [#tpu.dimension_semantics<parallel>], iteration_bounds = array<i64: 1>, scalar_prefetch = 0 : i64, scratch_operands = 0 : i64, tpu.core_type = #tpu.core_type<tc>, window_params = [{transform_indices = @transform_0, window_bounds = array<i64: 8, 2, 32>}, {transform_indices = @transform_1, window_bounds = array<i64: 8, 32>}, {pipeline_mode = #tpu.pipeline_mode<synchronous>, transform_indices = @transform_2, window_bounds = array<i64: 3, 32, 64>}, {pipeline_mode = #tpu.pipeline_mode<synchronous>, transform_indices = @transform_3, window_bounds = array<i64: 1, 64>}, {pipeline_mode = #tpu.pipeline_mode<synchronous>, transform_indices = @transform_4, window_bounds = array<i64: 1, 64>}, {pipeline_mode = #tpu.pipeline_mode<synchronous>, transform_indices = @transform_5, window_bounds = array<i64: 1, 1>}, {transform_indices = @transform_6, window_bounds = array<i64: 8, 2>}]} {
    %c0 = arith.constant 0 : index
    %c0_0 = arith.constant 0 : index
    %c0_1 = arith.constant 0 : index
    %0 = vector.load %arg1[%c0, %c0_0, %c0_1] : memref<8x2x32xf32, #tpu.memory_space<vmem>>, vector<8x1x32xf32>
    %1 = vector.shape_cast %0 : vector<8x1x32xf32> to vector<8x32xf32>
    %c0_2 = arith.constant 0 : index
    %c1 = arith.constant 1 : index
    %c0_3 = arith.constant 0 : index
    %2 = vector.load %arg1[%c0_2, %c1, %c0_3] : memref<8x2x32xf32, #tpu.memory_space<vmem>>, vector<8x1x32xf32>
    %3 = vector.shape_cast %2 : vector<8x1x32xf32> to vector<8x32xf32>
    %c0_4 = arith.constant 0 : index
    %c0_5 = arith.constant 0 : index
    %4 = vector.load %arg2[%c0_4, %c0_5] : memref<8x32xf32, #tpu.memory_space<vmem>>, vector<8x32xf32>
    %5 = arith.mulf %4, %1 : vector<8x32xf32>
    %6 = arith.mulf %4, %3 : vector<8x32xf32>
    %c1_6 = arith.constant 1 : index
    %c0_7 = arith.constant 0 : index
    %c0_8 = arith.constant 0 : index
    %7 = vector.load %arg3[%c1_6, %c0_7, %c0_8] : memref<3x32x64xf32, #tpu.memory_space<vmem>>, vector<1x32x64xf32>
    %8 = vector.shape_cast %7 : vector<1x32x64xf32> to vector<32x64xf32>
    %cst = arith.constant dense<0.000000e+00> : vector<8x64xf32>
    %9 = tpu.matmul %4, %8, %cst {dimension_numbers = #tpu.dot_dimension_numbers<[1], [0], [0], [1], [0, 0, 1, 1], [], []>} : vector<8x32xf32>, vector<32x64xf32>, vector<8x64xf32> -> vector<8x64xf32>
    %c0_9 = arith.constant 0 : index
    %c0_10 = arith.constant 0 : index
    %10 = vector.load %arg4[%c0_9, %c0_10] : memref<1x64xf32, #tpu.memory_space<vmem>>, vector<1x64xf32>
    %11 = vector.broadcast %10 : vector<1x64xf32> to vector<8x64xf32>
    %12 = arith.addf %9, %11 : vector<8x64xf32>
    %c0_11 = arith.constant 0 : index
    %c0_12 = arith.constant 0 : index
    %c0_13 = arith.constant 0 : index
    %13 = vector.load %arg3[%c0_11, %c0_12, %c0_13] : memref<3x32x64xf32, #tpu.memory_space<vmem>>, vector<1x32x64xf32>
    %14 = vector.shape_cast %13 : vector<1x32x64xf32> to vector<32x64xf32>
    %cst_14 = arith.constant dense<0.000000e+00> : vector<8x64xf32>
    %15 = tpu.matmul %1, %14, %cst_14 {dimension_numbers = #tpu.dot_dimension_numbers<[1], [0], [0], [1], [0, 0, 1, 1], [], []>} : vector<8x32xf32>, vector<32x64xf32>, vector<8x64xf32> -> vector<8x64xf32>
    %c2 = arith.constant 2 : index
    %c0_15 = arith.constant 0 : index
    %c0_16 = arith.constant 0 : index
    %16 = vector.load %arg3[%c2, %c0_15, %c0_16] : memref<3x32x64xf32, #tpu.memory_space<vmem>>, vector<1x32x64xf32>
    %17 = vector.shape_cast %16 : vector<1x32x64xf32> to vector<32x64xf32>
    %cst_17 = arith.constant dense<0.000000e+00> : vector<8x64xf32>
    %18 = tpu.matmul %5, %17, %cst_17 {dimension_numbers = #tpu.dot_dimension_numbers<[1], [0], [0], [1], [0, 0, 1, 1], [], []>} : vector<8x32xf32>, vector<32x64xf32>, vector<8x64xf32> -> vector<8x64xf32>
    %19 = arith.addf %15, %18 : vector<8x64xf32>
    %20 = arith.addf %19, %12 : vector<8x64xf32>
    %cst_18 = arith.constant 0.000000e+00 : f32
    %21 = vector.broadcast %cst_18 : f32 to vector<8x64xf32>
    %22 = arith.maximumf %20, %21 : vector<8x64xf32>
    %c0_19 = arith.constant 0 : index
    %c0_20 = arith.constant 0 : index
    %23 = vector.load %arg5[%c0_19, %c0_20] : memref<1x64xf32, #tpu.memory_space<vmem>>, vector<1x64xf32>
    %24 = vector.broadcast %23 : vector<1x64xf32> to vector<8x64xf32>
    %25 = arith.mulf %22, %24 : vector<8x64xf32>
    %cst_21 = arith.constant dense<0.000000e+00> : vector<8xf32>
    %26 = vector.multi_reduction <add>, %25, %cst_21 [1] : vector<8x64xf32> to vector<8xf32>
    %27 = vector.shape_cast %26 : vector<8xf32> to vector<8x1xf32>
    %c0_22 = arith.constant 0 : index
    %c0_23 = arith.constant 0 : index
    %28 = vector.load %arg6[%c0_22, %c0_23] : memref<1x1xf32, #tpu.memory_space<vmem>>, vector<1x1xf32>
    %29 = vector.broadcast %28 : vector<1x1xf32> to vector<8x1xf32>
    %30 = arith.addf %27, %29 : vector<8x1xf32>
    %c0_24 = arith.constant 0 : index
    %c0_25 = arith.constant 0 : index
    %c0_26 = arith.constant 0 : index
    %31 = vector.load %arg3[%c0_24, %c0_25, %c0_26] : memref<3x32x64xf32, #tpu.memory_space<vmem>>, vector<1x32x64xf32>
    %32 = vector.shape_cast %31 : vector<1x32x64xf32> to vector<32x64xf32>
    %cst_27 = arith.constant dense<0.000000e+00> : vector<8x64xf32>
    %33 = tpu.matmul %3, %32, %cst_27 {dimension_numbers = #tpu.dot_dimension_numbers<[1], [0], [0], [1], [0, 0, 1, 1], [], []>} : vector<8x32xf32>, vector<32x64xf32>, vector<8x64xf32> -> vector<8x64xf32>
    %c2_28 = arith.constant 2 : index
    %c0_29 = arith.constant 0 : index
    %c0_30 = arith.constant 0 : index
    %34 = vector.load %arg3[%c2_28, %c0_29, %c0_30] : memref<3x32x64xf32, #tpu.memory_space<vmem>>, vector<1x32x64xf32>
    %35 = vector.shape_cast %34 : vector<1x32x64xf32> to vector<32x64xf32>
    %cst_31 = arith.constant dense<0.000000e+00> : vector<8x64xf32>
    %36 = tpu.matmul %6, %35, %cst_31 {dimension_numbers = #tpu.dot_dimension_numbers<[1], [0], [0], [1], [0, 0, 1, 1], [], []>} : vector<8x32xf32>, vector<32x64xf32>, vector<8x64xf32> -> vector<8x64xf32>
    %37 = arith.addf %33, %36 : vector<8x64xf32>
    %38 = arith.addf %37, %12 : vector<8x64xf32>
    %cst_32 = arith.constant 0.000000e+00 : f32
    %39 = vector.broadcast %cst_32 : f32 to vector<8x64xf32>
    %40 = arith.maximumf %38, %39 : vector<8x64xf32>
    %c0_33 = arith.constant 0 : index
    %c0_34 = arith.constant 0 : index
    %41 = vector.load %arg5[%c0_33, %c0_34] : memref<1x64xf32, #tpu.memory_space<vmem>>, vector<1x64xf32>
    %42 = vector.broadcast %41 : vector<1x64xf32> to vector<8x64xf32>
    %43 = arith.mulf %40, %42 : vector<8x64xf32>
    %cst_35 = arith.constant dense<0.000000e+00> : vector<8xf32>
    %44 = vector.multi_reduction <add>, %43, %cst_35 [1] : vector<8x64xf32> to vector<8xf32>
    %45 = vector.shape_cast %44 : vector<8xf32> to vector<8x1xf32>
    %c0_36 = arith.constant 0 : index
    %c0_37 = arith.constant 0 : index
    %46 = vector.load %arg6[%c0_36, %c0_37] : memref<1x1xf32, #tpu.memory_space<vmem>>, vector<1x1xf32>
    %47 = vector.broadcast %46 : vector<1x1xf32> to vector<8x1xf32>
    %48 = arith.addf %45, %47 : vector<8x1xf32>
    %49 = tpu.concatenate %30, %48 in 1 : vector<8x1xf32>, vector<8x1xf32> -> vector<8x2xf32>
    %c0_38 = arith.constant 0 : index
    %c0_39 = arith.constant 0 : index
    %50 = vector.load %arg7[%c0_38, %c0_39] : memref<8x2xf32, #tpu.memory_space<vmem>>, vector<8x2xf32>
    tpu.vector_store %arg7[%c0_38, %c0_39], %49 {strides = array<i32>} : memref<8x2xf32, #tpu.memory_space<vmem>>, vector<8x2xf32>,
    return
  }
  func.func @transform_0(%arg0: i32) -> (i32, i32, i32) {
    %c0_i32 = arith.constant 0 : i32
    %c0_i32_0 = arith.constant 0 : i32
    %c0_i32_1 = arith.constant 0 : i32
    return %arg0, %c0_i32, %c0_i32_0 : i32, i32, i32
  }
  func.func @transform_1(%arg0: i32) -> (i32, i32) {
    %c0_i32 = arith.constant 0 : i32
    %c0_i32_0 = arith.constant 0 : i32
    return %arg0, %c0_i32 : i32, i32
  }
  func.func @transform_2(%arg0: i32) -> (i32, i32, i32) {
    %c0_i32 = arith.constant 0 : i32
    %c0_i32_0 = arith.constant 0 : i32
    %c0_i32_1 = arith.constant 0 : i32
    %c0_i32_2 = arith.constant 0 : i32
    return %c0_i32, %c0_i32_0, %c0_i32_1 : i32, i32, i32
  }
  func.func @transform_3(%arg0: i32) -> (i32, i32) {
    %c0_i32 = arith.constant 0 : i32
    %c0_i32_0 = arith.constant 0 : i32
    %c0_i32_1 = arith.constant 0 : i32
    return %c0_i32, %c0_i32_0 : i32, i32
  }
  func.func @transform_4(%arg0: i32) -> (i32, i32) {
    %c0_i32 = arith.constant 0 : i32
    %c0_i32_0 = arith.constant 0 : i32
    %c0_i32_1 = arith.constant 0 : i32
    return %c0_i32, %c0_i32_0 : i32, i32
  }
  func.func @transform_5(%arg0: i32) -> (i32, i32) {
    %c0_i32 = arith.constant 0 : i32
    %c0_i32_0 = arith.constant 0 : i32
    %c0_i32_1 = arith.constant 0 : i32
    return %c0_i32, %c0_i32_0 : i32, i32
  }
  func.func @transform_6(%arg0: i32) -> (i32, i32) {
    %c0_i32 = arith.constant 0 : i32
    %c0_i32_0 = arith.constant 0 : i32
    return %arg0, %c0_i32 : i32, i32
  }
}

</mosaic_0001>

<bundles_post_ra>
// kernel: tpu_custom_call.1
= control target key start
LH: loop header
LB: loop body
LE: loop exit
PB: predicated region body
PF: predicated region fallthrough
CT: control target
= control target key end

     0   :  { %s499_s0 = inlined_call_operand.hbm [shape: f32[8,2,32], index: 0, kind: input, shape index: {}]   ;;  %s500_s1 = inlined_call_operand.hbm [shape: f32[8,32], index: 1, kind: input, shape index: {}]   ;;  %s501_s2 = inlined_call_operand.hbm [shape: f32[3,32,64], index: 2, kind: input, shape index: {}]   ;;  %s502_s3 = inlined_call_operand.vmem [shape: f32[1,64], index: 3, kind: input, shape index: {}]   ;;  %s503_s4 = inlined_call_operand.vmem [shape: f32[1,64], index: 4, kind: input, shape index: {}]   ;;  %s504_s5 = inlined_call_operand.<no memory space> [shape: f32[1,1], index: 5, kind: input, shape index: {}]   ;;  %s505_s6 = inlined_call_operand.vmem [shape: f32[8,2], index: 6, kind: output, shape index: {}]  }
   0x1   :  { %v11_v0 = vstv %s504_s5 }
   0x2   :  { %12 = vst [vmem:[#allocation2] sm:$0x1] %v11_v0 }
   0x3   :  { %13 = vsyncpa [#allocation4], 0 }
   0x4   :  { %14 = vsyncpa [#allocation6], 0  ;;  %s33_s25 = sshll.u32 %s500_s1, 4  ;;  %s403_s26 = smov [#allocation5]   ;;  %s34_s25 = int_to_ptr.hbm [resolvable:$true] %s33_s25 }
   0x5   :  { %s35_s27 = sshll.u32 %s403_s26, 4  ;;  %s19_s30 = sshll.u32 %s499_s0, 4  ;;  %s36_s27 = int_to_ptr.vmem [resolvable:$true] %s35_s27  ;;  %s20_s30 = int_to_ptr.hbm [resolvable:$true] %s19_s30 }
   0x6   :  { %38 = dma.hbm_to_vmem [thread:$0]  %s34_s25, 128, %s36_s27, [#allocation6]  }
   0x7   :  { %s404_s7 = smov [#allocation3]   ;;  %s405_s5 = smov 32  }
   0x8   :  { %s21_s8 = sshll.u32 %s404_s7, 4  ;;  %s406_s9 = smov 2   ;;  %s22_s8 = int_to_ptr.vmem [resolvable:$true] %s21_s8 }
   0x9   :  { %27 = dma.hbm_to_vmem [thread:$0]  %s20_s30, 256, %s22_s8, [#allocation4], %s405_s5, %s405_s5, %s406_s9  }
   0xa   :  { %s43_s1 = sshll.u32 %s501_s2, 4  ;;  %s407_s12 = smov [#allocation7]   ;;  %s44_s1 = int_to_ptr.hbm [resolvable:$true] %s43_s1 }
   0xb   :  { %s45_s13 = sshll.u32 %s407_s12, 4  ;;  %s408_s14 = smov 128   ;;  %s46_s13 = int_to_ptr.vmem [resolvable:$true] %s45_s13 }
   0xc   :  { %s409_s15 = smov 8  }
   0xd   :  { %51 = dma.hbm_to_vmem [thread:$0]  %s44_s1, 1536, %s46_s13, [#allocation6], %s408_s14, %s408_s14, %s409_s15  }
   0xe   :  { %399 = dma.done.wait [#allocation4], 256  }
   0xf   :  { %400 = vsyncadd [#allocation4], 4294967040 }
  0x10   :  { %401 = dma.done.wait [#allocation6], 1664  }
  0x11   :  { %402 = vsyncadd [#allocation6], 4294965632  ;;  %v146_v1 = vld [vmem:[#allocation7 + $0x38] sm:$0xff]  ;;  %v145_v3 = vld [vmem:[#allocation7 + $0x30] sm:$0xff]  ;;  %vm151_vm0 = vcmask 261120   ;;  %vm96_vm1 = vcmask 1041409  }
  0x12   :  { %v178_v2 = vld [vmem:[#allocation7 + $0x18] sm:$0xff]  ;;  %167 = vmatpush.msra.mxu0 %v146_v1  ;;  %v177_v4 = vld [vmem:[#allocation7 + $0x10] sm:$0xff]  ;;  %v144_v6 = vld [vmem:[#allocation7 + $0x28] sm:$0xff]  ;;  %vm99_vm2 = vcmask 1042434   ;;  %vm102_vm3 = vcmask 1043459   ;;  %vm105_vm4 = vcmask 1044484  }
  0x13   :  { %221 = vmatpush.msra.mxu2 %v178_v2  ;;  %v183_v5 = vld [vmem:[#allocation7 + $0x58] sm:$0xff]  ;;  %v458_v7 = vld [vmem:[#allocation7 + $0x8] sm:$0xff]  ;;  %v182_v8 = vld [vmem:[#allocation7 + $0x50] sm:$0xff]  ;;  %vm108_vm5 = vcmask 1045509   ;;  %vm111_vm6 = vcmask 1046534   ;;  %vm114_vm7 = vcmask 1047559  }
  0x14   :  { %260 = vmatpush.msra.mxu3 %v183_v5  ;;  %v143_v9 = vld [vmem:[#allocation7 + $0x20] sm:$0xff]  ;;  %199 = vmatpush.msra.mxu1 %v183_v5  ;;  %v181_v11 = vld [vmem:[#allocation7 + $0x48] sm:$0xff]  ;;  %v462_v12 = vld [vmem:[#allocation5] sm:$0xff]  ;;  %vm236_vm8 = vcmask 523264   ;;  %vm301_vm9 = vcmask 7168   ;;  %vm303_vm10 = vcmask 15360  }
  0x15   :  { %168 = vmatpush.msra.mxu0 %v145_v3  ;;  %222 = vmatpush.msra.mxu2 %v177_v4  ;;  %v460_v10 = vld [vmem:[#allocation7] sm:$0xff]  ;;  %v70_v13 = vld [vmem:[#allocation3] sm:$0x1]  ;;  %v71_v14 = vld [vmem:[#allocation3 + $0x2] sm:$0x1] }
  0x16   :  { %261 = vmatpush.msra.mxu3 %v182_v8  ;;  %v72_v15 = vld [vmem:[#allocation3 + $0x4] sm:$0x1]  ;;  %200 = vmatpush.msra.mxu1 %v182_v8  ;;  %v73_v16 = vld [vmem:[#allocation3 + $0x6] sm:$0x1]  ;;  %v74_v17 = vld [vmem:[#allocation3 + $0x8] sm:$0x1] }
  0x17   :  { %169 = vmatpush.msra.mxu0 %v144_v6  ;;  %223 = vmatpush.msra.mxu2 %v458_v7  ;;  %v75_v18 = vld [vmem:[#allocation3 + $0xa] sm:$0x1]  ;;  %v76_v19 = vld [vmem:[#allocation3 + $0xc] sm:$0x1]  ;;  %v77_v20 = vld [vmem:[#allocation3 + $0xe] sm:$0x1] }
  0x18   :  { %262 = vmatpush.msra.mxu3 %v181_v11  ;;  %v95_v21 = vrot.slane %v71_v14, 7  ;;  %v98_v22 = vrot.slane %v72_v15, 6  ;;  %201 = vmatpush.msra.mxu1 %v181_v11  ;;  %v101_v23 = vrot.slane %v73_v16, 5  ;;  %v104_v24 = vrot.slane %v74_v17, 4  ;;  %v180_v25 = vld [vmem:[#allocation7 + $0x40] sm:$0xff] }
  0x19   :  { %170 = vmatpush.msra.mxu0 %v143_v9  ;;  %224 = vmatpush.msra.mxu2 %v460_v10  ;;  %v107_v27 = vrot.slane %v75_v18, 3  ;;  %v110_v28 = vrot.slane %v76_v19, 2  ;;  %v113_v29 = vrot.slane %v77_v20, 1  ;;  %v79_v30 = vld [vmem:[#allocation3 + $0x3] sm:$0x1] }
  0x1a   :  { %311 = vmatmul.msk.f32.vlgmr.msra.gmra.mxu0 %vm151_vm0, %v462_v12  ;;  %v97_v26 = vsel %vm96_vm1, %v95_v21, %v70_v13  ;;  %263 = vmatpush.msra.mxu3 %v180_v25  ;;  %v80_v32 = vld [vmem:[#allocation3 + $0x5] sm:$0x1]  ;;  %v81_v33 = vld [vmem:[#allocation3 + $0x7] sm:$0x1]  ;;  %v82_v34 = vld [vmem:[#allocation3 + $0x9] sm:$0x1] }
  0x1b   :  { %v100_v31 = vsel %vm99_vm2, %v98_v22, %v97_v26  ;;  %282 = vmatpush.msrb.mxu0 %v178_v2  ;;  %202 = vmatpush.msra.mxu1 %v180_v25  ;;  %v78_v36 = vld [vmem:[#allocation3 + $0x1] sm:$0x1]  ;;  %v83_v37 = vld [vmem:[#allocation3 + $0xb] sm:$0x1]  ;;  %v84_v38 = vld [vmem:[#allocation3 + $0xd] sm:$0x1] }
  0x1c   :  { %v103_v35 = vsel %vm102_vm3, %v101_v23, %v100_v31  ;;  %v126_v40 = vrot.slane %v79_v30, 7  ;;  %v128_v41 = vrot.slane %v80_v32, 6  ;;  %v130_v42 = vrot.slane %v81_v33, 5  ;;  %v85_v44 = vld [vmem:[#allocation3 + $0xf] sm:$0x1] }
  0x1d   :  { %v106_v39 = vsel %vm105_vm4, %v104_v24, %v103_v35  ;;  %283 = vmatpush.msrb.mxu0 %v177_v4  ;;  %v132_v45 = vrot.slane %v82_v34, 4  ;;  %v134_v48 = vrot.slane %v83_v37, 3  ;;  %v136_v51 = vrot.slane %v84_v38, 2  ;;  %v324_v61 = vld [vmem:[%s502_s3] ss:$0 sm:$0xff]  ;;  %s410_s3 = smov 1  }
  0x1e   :  { %v109_v43 = vsel %vm108_vm5, %v107_v27, %v106_v39  ;;  %v127_v47 = vsel %vm96_vm1, %v126_v40, %v78_v36  ;;  %v138_v54 = vrot.slane %v85_v44, 1  ;;  %v325_v8 = vld [vmem:[%s503_s4] ss:$0 sm:$0xff] }
  0x1f   :  { %v112_v46 = vsel %vm111_vm6, %v110_v28, %v109_v43  ;;  %284 = vmatpush.msrb.mxu0 %v458_v7  ;;  %v129_v50 = vsel %vm99_vm2, %v128_v41, %v127_v47  ;;  %v326_v14 = vld [vmem:[#allocation2] ss:$0 sm:$0xff] }
  0x20   :  { %v115_v49 = vsel %vm114_vm7, %v113_v29, %v112_v46  ;;  %v131_v53 = vsel %vm102_vm3, %v130_v42, %v129_v50 }
  0x21   :  { %v117_v52 = vmul.f32 %v115_v49, %v462_v12  ;;  %313 = vmatmul.msk.f32.vlgmr.msra.gmra.mxu2 %vm151_vm0, %v115_v49  ;;  %285 = vmatpush.msrb.mxu0 %v460_v10  ;;  %v133_v55 = vsel %vm105_vm4, %v132_v45, %v131_v53 }
  0x22   :  { %v135_v56 = vsel %vm108_vm5, %v134_v48, %v133_v55 }
  0x23   :  { %312 = vmatmul.msk.f32.vlgmr.msra.gmra.mxu1 %vm151_vm0, %v117_v52  ;;  %v137_v57 = vsel %vm111_vm6, %v136_v51, %v135_v56 }
  0x24   :  { %v139_v58 = vsel %vm114_vm7, %v138_v54, %v137_v57 }
  0x25   :  { %v141_v59 = vmul.f32 %v139_v58, %v462_v12  ;;  %315 = vmatmul.msk.f32.vlgmr.msrb.gmra.mxu0 %vm151_vm0, %v139_v58 }
  0x27   :  { %314 = vmatmul.msk.f32.vlgmr.msra.gmra.mxu3 %vm151_vm0, %v141_v59 }
  0x97   :  { %v172_v60 = vpop.f32.mrf.mxu0 }
  0x98   :  { %v173_v2 = vadd.f32 %v324_v61, %v172_v60 }
  0xa0   :  { %v204_v62 = vpop.f32.mrf.mxu1 }
  0xa2   :  { %v287_v0 = vpop.f32.mrf.mxu0 }
  0xa4   :  { %v226_v63 = vpop.f32.mrf.mxu2 }
  0xa5   :  { %v227_v3 = vadd.f32 %v226_v63, %v204_v62 }
  0xa7   :  { %v229_v6 = vadd.f32 %v227_v3, %v173_v2 }
  0xa9   :  { %v230_v10 = vmax.f32 %v229_v6, 0.0 }
  0xaa   :  { %v265_v1 = vpop.f32.mrf.mxu3 }
  0xab   :  { %v288_v4 = vadd.f32 %v287_v0, %v265_v1  ;;  %v235_v12 = vmul.f32 %v325_v8, %v230_v10 }
  0xad   :  { %v290_v5 = vadd.f32 %v288_v4, %v173_v2  ;;  %v237_v13 = vsel %vm236_vm8, %v235_v12, 0.0 }
  0xaf   :  { %v291_v7 = vmax.f32 %v290_v5, 0.0 }
  0xb1   :  { %v292_v9 = vmul.f32 %v325_v8, %v291_v7 }
  0xb3   :  { %v293_v11 = vsel %vm236_vm8, %v292_v9, 0.0 }
  0xb4   :  { %294 = vadd.xlane.f32.xlu0 %v293_v11 }
  0xbc   :  { %238 = vadd.xlane.f32.xlu0 %v237_v13 }
 0x127   :  { %v295_v15 = vpop.xlane.xlu0 %294 }
 0x128   :  { %v296_v16 = vadd.f32 %v326_v14, %v295_v15 }
 0x12a   :  { %298 = vrot.lane.b32.xlu1 %v296_v16, %s410_s3 }
 0x12f   :  { %v239_v17 = vpop.xlane.xlu0 %238 }
 0x130   :  { %v244_v18 = vadd.f32 %v326_v14, %v239_v17 }
 0x19c   :  { %v299_v19 = vpop.permute.xlu1 %298 }
 0x19d   :  { %v302_v20 = vsel %vm301_vm9, %v244_v18, %v299_v19 }
 0x19e   :  { %304 = vst.msk [vmem:[%s505_s6] sm:$0xff] %vm303_vm10, %v302_v20 }
 0x19f   :  { %309 = vsyncpa [#allocation4], 1 }
 0x1a0   :  { %310 = vsyncpa [#allocation6], 1 }

</bundles_post_ra>
